<compile_context>
chip_gen: v6e
topology: v6e:2x2x1
jax: 0.10.0
libtpu: 0.0.40
codegen_flags: <defaults>
</compile_context>

<pallas_src>
import functools

import jax
import jax.numpy as jnp
from jax import lax
from jax.experimental import pallas as pl
from jax.experimental.pallas import tpu as pltpu

LANES = 128
SUBLANES = 8
CHUNK_ROWS = 256  # inner-loop chunk: 256 x 128 x 4B = 128 KiB per input


def _round_up(x, m):
    return ((x + m - 1) // m) * m


def _default_max_tile_rows():
    # Larger tiles on v7x-class chips (3.2 TB/s HBM per TC); 4096 rows
    # (2 MiB f32 per input per pipeline buffer) is plenty for v5e/v6e.
    try:
        kind = jax.devices()[0].device_kind.lower()
    except Exception:
        return 4096
    if "v7" in kind or "tpu7" in kind or "7x" in kind:
        return 8192
    return 4096


def _wape_kernel(p_ref, t_ref, out_ref, num_acc, den_acc, *,
                 chunk_rows, n_chunks, valid_rows_last):
    i = pl.program_id(0)
    last = pl.num_programs(0) - 1

    @pl.when(i == 0)
    def _init():
        num_acc[...] = jnp.zeros_like(num_acc)
        den_acc[...] = jnp.zeros_like(den_acc)

    def accumulate_chunk(row0, valid_rows):
        p = p_ref[pl.ds(row0, chunk_rows), :].astype(jnp.float32)
        t = t_ref[pl.ds(row0, chunk_rows), :].astype(jnp.float32)
        if valid_rows is not None:
            # Rows past the (unpadded) input are unspecified VMEM contents;
            # zero them before any arithmetic.
            rid = lax.broadcasted_iota(jnp.int32, (chunk_rows, LANES), 0) + row0
            keep = rid < valid_rows
            p = jnp.where(keep, p, 0.0)
            t = jnp.where(keep, t, 0.0)
        # vreg-wide (8,128) accumulation: sublane-group sums are pure VPU adds;
        # the expensive cross-lane reduce happens exactly once, at finalize.
        num_acc[...] += jnp.sum(
            jnp.abs(p - t).reshape(chunk_rows // SUBLANES, SUBLANES, LANES), axis=0)
        den_acc[...] += jnp.sum(
            jnp.abs(t).reshape(chunk_rows // SUBLANES, SUBLANES, LANES), axis=0)

    def accumulate_tile(valid_rows):
        if n_chunks == 1:
            accumulate_chunk(0, valid_rows)
        else:
            def body(c, carry):
                row0 = pl.multiple_of(c * chunk_rows, chunk_rows)
                accumulate_chunk(row0, valid_rows)
                return carry
            lax.fori_loop(0, n_chunks, body, 0, unroll=True)

    if valid_rows_last == n_chunks * chunk_rows:
        # Every tile is fully in-bounds: single unmasked path, no select ops.
        accumulate_tile(None)
    else:
        @pl.when(i != last)
        def _full_tiles():
            accumulate_tile(None)

        @pl.when(i == last)
        def _tail_tile():
            accumulate_tile(valid_rows_last)

    @pl.when(i == last)
    def _finalize():
        # Lane-dense partial sums; cross-lane reduce + eps + divide in wrapper.
        out_ref[0, :] = jnp.sum(num_acc[...], axis=0)
        out_ref[1, :] = jnp.sum(den_acc[...], axis=0)


def wape(y_pred, y_true, eps=1e-9):
    """Pallas TPU implementation of WAPE.forward. Returns a scalar float32."""
    assert y_pred.shape == y_true.shape, "shape mismatch"
    total = int(y_pred.size)
    assert total > 0, "empty input"

    p_itemsize = jnp.dtype(y_pred.dtype).itemsize
    t_itemsize = jnp.dtype(y_true.dtype).itemsize
    # dtype-aware sublane multiple: 8 for 4B elems, 16 for 2B, 32 for 1B.
    sub_mult = SUBLANES * max(1, 4 // max(1, min(p_itemsize, t_itemsize)))

    p_flat = y_pred.reshape(-1)
    t_flat = y_true.reshape(-1)
    rows = -(-total // LANES)
    rem = total % LANES
    if rem:
        # Minimal pad to the next multiple of 128 lanes so the flat array can
        # be viewed as a lane-dense (rows, 128) slab; only pays a copy when
        # numel % 128 != 0.  Padded zeros contribute 0 to both sums.
        pad = LANES - rem
        p_flat = jnp.pad(p_flat, (0, pad))
        t_flat = jnp.pad(t_flat, (0, pad))
    p2d = p_flat.reshape(rows, LANES)
    t2d = t_flat.reshape(rows, LANES)

    max_tile_rows = _default_max_tile_rows()
    chunk = max(CHUNK_ROWS, sub_mult)  # 256 already covers 1-byte dtypes
    if rows <= chunk:
        tile_rows = _round_up(rows, sub_mult)
        chunk_rows = tile_rows
    else:
        tile_rows = min(max_tile_rows, _round_up(rows, chunk))
        chunk_rows = chunk
    n_chunks = tile_rows // chunk_rows
    grid_n = pl.cdiv(rows, tile_rows)
    valid_rows_last = rows - (grid_n - 1) * tile_rows  # static Python int

    kernel = functools.partial(
        _wape_kernel,
        chunk_rows=chunk_rows,
        n_chunks=n_chunks,
        valid_rows_last=valid_rows_last,
    )

    # 2 inputs x double-buffered blocks, plus headroom for chunk temps.
    in_bytes = 2 * 2 * tile_rows * LANES * max(p_itemsize, t_itemsize)
    vmem_limit = int(min(48 << 20, max(32 << 20, in_bytes + (8 << 20))))

    parts = pl.pallas_call(
        kernel,
        out_shape=jax.ShapeDtypeStruct((2, LANES), jnp.float32),
        grid_spec=pltpu.PrefetchScalarGridSpec(
            num_scalar_prefetch=0,
            grid=(grid_n,),
            in_specs=[
                pl.BlockSpec((tile_rows, LANES), lambda i: (i, 0)),
                pl.BlockSpec((tile_rows, LANES), lambda i: (i, 0)),
            ],
            out_specs=pl.BlockSpec((2, LANES), lambda i: (0, 0)),
            scratch_shapes=[
                pltpu.VMEM((SUBLANES, LANES), jnp.float32),  # numerator acc
                pltpu.VMEM((SUBLANES, LANES), jnp.float32),  # denominator acc
            ],
        ),
        compiler_params=pltpu.CompilerParams(
            dimension_semantics=("arbitrary",),
            vmem_limit_bytes=vmem_limit,
        ),
    )(p2d, t2d)

    num = jnp.sum(parts[0, :])
    # eps applied as eps * N, matching sum(eps + |y_true|); Python-float literal.
    den = jnp.sum(parts[1, :]) + jnp.float32(float(eps) * float(total))
    return num / den


if __name__ == "__main__":
    key = jax.random.PRNGKey(0)
    k1, k2, k3, k4 = jax.random.split(key, 4)
    eps = 1e-9

    # NCHW inputs, as the PyTorch module would receive.
    x_shape = (2, 4, 16, 16)
    y_pred = jax.random.normal(k1, x_shape, dtype=jnp.float32)
    y_true = jax.random.normal(k2, x_shape, dtype=jnp.float32)

    result = jax.block_until_ready(wape(y_pred, y_true))
    ref = jnp.sum(jnp.abs(y_pred - y_true)) / jnp.sum(eps + jnp.abs(y_true))
    assert jnp.allclose(result, ref, rtol=1e-5, atol=1e-6), (result, ref)

    # Non-128-aligned size exercises the in-kernel tail-masking path.
    z_shape = (3, 5, 7, 11)  # 1155 elements
    z_pred = jax.random.normal(k3, z_shape, dtype=jnp.float32)
    z_true = jax.random.normal(k4, z_shape, dtype=jnp.float32)
    result2 = jax.block_until_ready(wape(z_pred, z_true))
    ref2 = jnp.sum(jnp.abs(z_pred - z_true)) / jnp.sum(eps + jnp.abs(z_true))
    assert jnp.allclose(result2, ref2, rtol=1e-5, atol=1e-6), (result2, ref2)

    print("KERNEL_OK")
</pallas_src>

<mosaic_0001>
module attributes {stable_mosaic.version = 11 : i64} {
  func.func @_wape_kernel(%arg0: i32, %arg1: memref<16x128xf32, #tpu.memory_space<vmem>>, %arg2: memref<16x128xf32, #tpu.memory_space<vmem>>, %arg3: memref<2x128xf32, #tpu.memory_space<vmem>>, %arg4: memref<8x128xf32, #tpu.memory_space<vmem>>, %arg5: memref<8x128xf32, #tpu.memory_space<vmem>>) attributes {dimension_semantics = [#tpu.dimension_semantics<arbitrary>], iteration_bounds = array<i64: 1>, scalar_prefetch = 0 : i64, scratch_operands = 2 : i64, tpu.core_type = #tpu.core_type<tc>, window_params = [{transform_indices = @transform_0, window_bounds = array<i64: 16, 128>}, {transform_indices = @transform_1, window_bounds = array<i64: 16, 128>}, {pipeline_mode = #tpu.pipeline_mode<synchronous>, transform_indices = @transform_2, window_bounds = array<i64: 2, 128>}]} {
    %c0_i32 = arith.constant 0 : i32
    %0 = arith.cmpi eq, %arg0, %c0_i32 : i32
    %1 = arith.extui %0 : i1 to i32
    %c0_i32_0 = arith.constant 0 : i32
    %2 = arith.cmpi ne, %1, %c0_i32_0 : i32
    scf.if %2 {
      %cst_15 = arith.constant 0.000000e+00 : f32
      %21 = vector.broadcast %cst_15 : f32 to vector<8x128xf32>
      %c0_16 = arith.constant 0 : index
      %c0_17 = arith.constant 0 : index
      %22 = vector.load %arg4[%c0_16, %c0_17] : memref<8x128xf32, #tpu.memory_space<vmem>>, vector<8x128xf32>
      tpu.vector_store %arg4[%c0_16, %c0_17], %21 {strides = array<i32>} : memref<8x128xf32, #tpu.memory_space<vmem>>, vector<8x128xf32>,
      %cst_18 = arith.constant 0.000000e+00 : f32
      %23 = vector.broadcast %cst_18 : f32 to vector<8x128xf32>
      %c0_19 = arith.constant 0 : index
      %c0_20 = arith.constant 0 : index
      %24 = vector.load %arg5[%c0_19, %c0_20] : memref<8x128xf32, #tpu.memory_space<vmem>>, vector<8x128xf32>
      tpu.vector_store %arg5[%c0_19, %c0_20], %23 {strides = array<i32>} : memref<8x128xf32, #tpu.memory_space<vmem>>, vector<8x128xf32>,
    } else {
    }
    %c0 = arith.constant 0 : index
    %c0_1 = arith.constant 0 : index
    %3 = vector.load %arg1[%c0, %c0_1] : memref<16x128xf32, #tpu.memory_space<vmem>>, vector<16x128xf32>
    %c0_2 = arith.constant 0 : index
    %c0_3 = arith.constant 0 : index
    %4 = vector.load %arg2[%c0_2, %c0_3] : memref<16x128xf32, #tpu.memory_space<vmem>>, vector<16x128xf32>
    %c0_4 = arith.constant 0 : index
    %c0_5 = arith.constant 0 : index
    %5 = vector.load %arg4[%c0_4, %c0_5] : memref<8x128xf32, #tpu.memory_space<vmem>>, vector<8x128xf32>
    %6 = arith.subf %3, %4 : vector<16x128xf32>
    %7 = math.absf %6 : vector<16x128xf32>
    %8 = vector.shape_cast %7 : vector<16x128xf32> to vector<2x8x128xf32>
    %cst = arith.constant dense<0.000000e+00> : vector<8x128xf32>
    %9 = vector.multi_reduction <add>, %8, %cst [0] : vector<2x8x128xf32> to vector<8x128xf32>
    %10 = arith.addf %5, %9 : vector<8x128xf32>
    %c0_6 = arith.constant 0 : index
    %c0_7 = arith.constant 0 : index
    %11 = vector.load %arg4[%c0_6, %c0_7] : memref<8x128xf32, #tpu.memory_space<vmem>>, vector<8x128xf32>
    tpu.vector_store %arg4[%c0_6, %c0_7], %10 {strides = array<i32>} : memref<8x128xf32, #tpu.memory_space<vmem>>, vector<8x128xf32>,
    %c0_8 = arith.constant 0 : index
    %c0_9 = arith.constant 0 : index
    %12 = vector.load %arg5[%c0_8, %c0_9] : memref<8x128xf32, #tpu.memory_space<vmem>>, vector<8x128xf32>
    %13 = math.absf %4 : vector<16x128xf32>
    %14 = vector.shape_cast %13 : vector<16x128xf32> to vector<2x8x128xf32>
    %cst_10 = arith.constant dense<0.000000e+00> : vector<8x128xf32>
    %15 = vector.multi_reduction <add>, %14, %cst_10 [0] : vector<2x8x128xf32> to vector<8x128xf32>
    %16 = arith.addf %12, %15 : vector<8x128xf32>
    %c0_11 = arith.constant 0 : index
    %c0_12 = arith.constant 0 : index
    %17 = vector.load %arg5[%c0_11, %c0_12] : memref<8x128xf32, #tpu.memory_space<vmem>>, vector<8x128xf32>
    tpu.vector_store %arg5[%c0_11, %c0_12], %16 {strides = array<i32>} : memref<8x128xf32, #tpu.memory_space<vmem>>, vector<8x128xf32>,
    %c0_i32_13 = arith.constant 0 : i32
    %18 = arith.cmpi eq, %arg0, %c0_i32_13 : i32
    %19 = arith.extui %18 : i1 to i32
    %c0_i32_14 = arith.constant 0 : i32
    %20 = arith.cmpi ne, %19, %c0_i32_14 : i32
    scf.if %20 {
      %c0_15 = arith.constant 0 : index
      %c0_16 = arith.constant 0 : index
      %21 = vector.load %arg4[%c0_15, %c0_16] : memref<8x128xf32, #tpu.memory_space<vmem>>, vector<8x128xf32>
      %cst_17 = arith.constant dense<0.000000e+00> : vector<128xf32>
      %22 = vector.multi_reduction <add>, %21, %cst_17 [0] : vector<8x128xf32> to vector<128xf32>
      %c0_18 = arith.constant 0 : index
      %c0_19 = arith.constant 0 : index
      %23 = vector.load %arg3[%c0_18, %c0_19] : memref<2x128xf32, #tpu.memory_space<vmem>>, vector<1x128xf32>
      %24 = vector.shape_cast %23 : vector<1x128xf32> to vector<128xf32>
      %25 = vector.shape_cast %22 : vector<128xf32> to vector<1x128xf32>
      tpu.vector_store %arg3[%c0_18, %c0_19], %25 {strides = array<i32>} : memref<2x128xf32, #tpu.memory_space<vmem>>, vector<1x128xf32>,
      %c0_20 = arith.constant 0 : index
      %c0_21 = arith.constant 0 : index
      %26 = vector.load %arg5[%c0_20, %c0_21] : memref<8x128xf32, #tpu.memory_space<vmem>>, vector<8x128xf32>
      %cst_22 = arith.constant dense<0.000000e+00> : vector<128xf32>
      %27 = vector.multi_reduction <add>, %26, %cst_22 [0] : vector<8x128xf32> to vector<128xf32>
      %c1 = arith.constant 1 : index
      %c0_23 = arith.constant 0 : index
      %28 = vector.load %arg3[%c1, %c0_23] : memref<2x128xf32, #tpu.memory_space<vmem>>, vector<1x128xf32>
      %29 = vector.shape_cast %28 : vector<1x128xf32> to vector<128xf32>
      %30 = vector.shape_cast %27 : vector<128xf32> to vector<1x128xf32>
      tpu.vector_store %arg3[%c1, %c0_23], %30 {strides = array<i32>} : memref<2x128xf32, #tpu.memory_space<vmem>>, vector<1x128xf32>,
    } else {
    }
    return
  }
  func.func @transform_0(%arg0: i32) -> (i32, i32) {
    %c0_i32 = arith.constant 0 : i32
    %c0_i32_0 = arith.constant 0 : i32
    return %arg0, %c0_i32 : i32, i32
  }
  func.func @transform_1(%arg0: i32) -> (i32, i32) {
    %c0_i32 = arith.constant 0 : i32
    %c0_i32_0 = arith.constant 0 : i32
    return %arg0, %c0_i32 : i32, i32
  }
  func.func @transform_2(%arg0: i32) -> (i32, i32) {
    %c0_i32 = arith.constant 0 : i32
    %c0_i32_0 = arith.constant 0 : i32
    %c0_i32_1 = arith.constant 0 : i32
    return %c0_i32, %c0_i32_0 : i32, i32
  }
}

</mosaic_0001>

<bundles_post_ra>
// kernel: tpu_custom_call.1
= control target key start
LH: loop header
LB: loop body
LE: loop exit
PB: predicated region body
PF: predicated region fallthrough
CT: control target
= control target key end

     0   :  { %7 = vsyncpa [#allocation5], 0  ;;  %s199_s0 = inlined_call_operand.hbm [shape: f32[16,128], index: 0, kind: input, shape index: {}]   ;;  %s200_s1 = inlined_call_operand.hbm [shape: f32[16,128], index: 1, kind: input, shape index: {}]   ;;  %s201_s2 = inlined_call_operand.hbm [shape: f32[2,128], index: 2, kind: output, shape index: {}]  }
   0x1   :  { %8 = vsyncpa [#allocation8], 0 }
   0x2   :  { %9 = vsyncpa [#allocation6], 0  ;;  %s170_s9 = smov [#allocation4]  }
   0x3   :  { %s15_s10 = sshll.u32 %s170_s9, 4  ;;  %s16_s10 = int_to_ptr.vmem [resolvable:$true] %s15_s10 }
   0x4   :  { %s112_s11 = scalar_lea.vmem %s16_s10, 256  ;;  %p117_p1 = scmp.lt.s32.totalorder %s16_s10, %s16_s10 }
   0x5   :  { %p113_p0 = scmp.ne.s32.totalorder %s16_s10, %s112_s11  ;;  %p118_p2 = scmp.lt.s32.totalorder %s112_s11, %s112_s11 }
   0x7   :  { %p119_p3 = por %p118_p2, %p117_p1 }
   0x9   :  { %p120_p4 = pnand %p119_p3, %p113_p0 }
   0xb   :  { %123 = shalt.err (!%p120_p4)
}
   0xc   :  { %s171_s12 = smov 128   ;;  %s172_s13 = smov 8  }
   0xd   :  { %21 = dma.hbm_to_vmem [thread:$0]  %s199_s0, 256, %s16_s10, [#allocation5], %s171_s12, %s171_s12, %s172_s13  }
   0xe   :  { %s173_s16 = smov [#allocation7]  }
   0xf   :  { %s27_s17 = sshll.u32 %s173_s16, 4  ;;  %s28_s17 = int_to_ptr.vmem [resolvable:$true] %s27_s17 }
  0x10   :  { %s132_s18 = scalar_lea.vmem %s28_s17, 256  ;;  %p137_p6 = scmp.lt.s32.totalorder %s28_s17, %s28_s17 }
  0x11   :  { %p133_p5 = scmp.ne.s32.totalorder %s28_s17, %s132_s18  ;;  %p138_p7 = scmp.lt.s32.totalorder %s132_s18, %s132_s18 }
  0x13   :  { %p139_p8 = por %p138_p7, %p137_p6 }
  0x15   :  { %p140_p9 = pnand %p139_p8, %p133_p5 }
  0x17   :  { %143 = shalt.err (!%p140_p9)
}
  0x18   :  { %33 = dma.hbm_to_vmem [thread:$0]  %s200_s1, 256, %s28_s17, [#allocation8], %s171_s12, %s171_s12, %s172_s13  }
  0x19   :  { %164 = dma.done.wait [#allocation5], 256  }
  0x1a   :  { %165 = vsyncadd [#allocation5], 4294967040 }
  0x1b   :  { %166 = dma.done.wait [#allocation8], 256  }
  0x1c   :  { %167 = vsyncadd [#allocation8], 4294967040  ;;  %v46_v0 = vld [vmem:[#allocation4] sm:$0xff]  ;;  %v47_v1 = vld [vmem:[#allocation4 + $0x8] sm:$0xff]  ;;  %s174_s0 = smov [#allocation9]  }
  0x1d   :  { %v48_v2 = vld [vmem:[#allocation7] sm:$0xff]  ;;  %v49_v3 = vld [vmem:[#allocation7 + $0x8] sm:$0xff]  ;;  %s89_s1 = sshll.u32 %s174_s0, 4  ;;  %s90_s1 = int_to_ptr.vmem [resolvable:$true] %s89_s1 }
  0x1e   :  { %v51_v4 = vsub.f32 %v46_v0, %v48_v2  ;;  %v59_v5 = vand.u32 2147483647, %v48_v2  ;;  %v52_v6 = vsub.f32 %v47_v1, %v49_v3  ;;  %v60_v7 = vand.u32 2147483647, %v49_v3  ;;  %s144_s21 = scalar_lea.vmem %s90_s1, 32  ;;  %p149_p11 = scmp.lt.s32.totalorder %s90_s1, %s90_s1 }
  0x1f   :  { %p145_p10 = scmp.ne.s32.totalorder %s90_s1, %s144_s21  ;;  %p150_p12 = scmp.lt.s32.totalorder %s144_s21, %s144_s21 }
  0x20   :  { %v53_v8 = vand.u32 2147483647, %v51_v4  ;;  %v54_v9 = vand.u32 2147483647, %v52_v6  ;;  %v61_v10 = vadd.f32 %v60_v7, %v59_v5 }
  0x21   :  { %p151_p13 = por %p150_p12, %p149_p11 }
  0x22   :  { %v55_v11 = vadd.f32 %v54_v9, %v53_v8  ;;  %v76_v12 = vrot.slane %v61_v10, 4 }
  0x23   :  { %p152_p0 = pnand %p151_p13, %p145_p10 }
  0x24   :  { %v68_v13 = vrot.slane %v55_v11, 4  ;;  %v77_v14 = vadd.f32 %v76_v12, %v61_v10 }
  0x26   :  { %v69_v15 = vadd.f32 %v68_v13, %v55_v11  ;;  %v78_v16 = vrot.slane %v77_v14, 2 }
  0x28   :  { %v70_v17 = vrot.slane %v69_v15, 2  ;;  %v79_v18 = vadd.f32 %v78_v16, %v77_v14 }
  0x2a   :  { %v71_v19 = vadd.f32 %v70_v17, %v69_v15  ;;  %v80_v20 = vrot.slane %v79_v18, 1 }
  0x2c   :  { %v72_v21 = vrot.slane %v71_v19, 1  ;;  %v81_v22 = vadd.f32 %v80_v20, %v79_v18 }
  0x2e   :  { %v73_v23 = vadd.f32 %v72_v21, %v71_v19  ;;  %82 = vst [vmem:[#allocation9 + $0x1] sm:$0x1] %v81_v22 }
  0x30   :  { %74 = vst [vmem:[#allocation9] sm:$0x1] %v73_v23 }
  0x31   :  { %155 = shalt.err (!%p152_p0)
}
  0x32   :  { %92 = dma.vmem_to_hbm [thread:$0]  %s90_s1, 32, %s201_s2, [#allocation6]  }
  0x33   :  { %168 = dma.done.wait [#allocation6], 32  }
  0x34   :  { %169 = vsyncadd [#allocation6], 4294967264 }
  0x35   :  { %96 = vsyncpa [#allocation5], 1 }
  0x36   :  { %97 = vsyncpa [#allocation8], 1 }
  0x37   :  { %98 = vsyncpa [#allocation6], 1 }

</bundles_post_ra>
